<compile_context>
chip_gen: v7x
topology: tpu7x:2x2x1
jax: 0.10.0
libtpu: 0.0.40
codegen_flags: <defaults>
</compile_context>

<pallas_src>
import jax
import jax.numpy as jnp
from jax.experimental import pallas as pl
from jax.experimental.pallas import tpu as pltpu


def conv1d_kernel(h_ref, v_ref, o_ref):
    """Per-group causal (full, truncated-to-P) 1D convolution on one row tile.

    h_ref: (Gb, P)  rows of H
    v_ref: (Gb, L)  per-row filters
    o_ref: (Gb, P)  Hv[g, t] = sum_s v[g, s] * H[g, t - s]   (H == 0 for t < s)
    """
    h = h_ref[...].astype(jnp.float32)   # f32 accumulation regardless of input dtype
    v = v_ref[...].astype(jnp.float32)
    Gb, P = h.shape
    L = v.shape[1]

    # Hoisted once above the tap loop: lane index of every element (2-D iota).
    col = jax.lax.broadcasted_iota(jnp.int32, (Gb, P), 1)

    # tap s = 0
    acc = v[:, 0:1] * h
    # taps s = 1 .. L-1: rotate along lanes (XLU slot), zero the wrapped head
    # (single VPU select), scale by the per-row tap and accumulate.
    for s in range(1, L):                 # L is small & static -> unrolled
        rolled = pltpu.roll(h, shift=s, axis=1)
        acc = acc + v[:, s:s + 1] * jnp.where(col >= s, rolled, 0.0)

    o_ref[...] = acc.astype(o_ref.dtype)


def _pick_group_tile(G, P, sublane):
    """Largest row-tile Gb (multiple of `sublane`, dividing G) under a VMEM budget.

    Budget: ~4 MiB of f32 per (Gb, P) block.  Double-buffered in+out blocks plus
    in-kernel temporaries stay well under 48 MiB, which fits every generation
    (v5e/v6e: 128 MiB VMEM, v7x: 64 MiB).  Also keeps >= 2 grid steps when G
    allows it so v7x's two TensorCores both get work.
    """
    max_block_elems = 1024 * 1024        # ~4 MiB f32 per (Gb, P) block
    cap = max(sublane, (max_block_elems // max(P, 1)) // sublane * sublane)
    cap = min(G, cap)
    if G > sublane:                      # keep the grid length >= 2 if possible
        cap = min(cap, max(sublane, (G // 2) // sublane * sublane))

    gb = sublane
    cand = sublane
    while cand <= cap:
        if G % cand == 0:
            gb = cand
        cand += sublane
    return gb


def module_conv1d(H, v_):
    """Equivalent of ModuleConv1d.forward(H, v_)."""
    B, M, K, P = H.shape
    L = v_.shape[-1]
    G = B * M * K

    h2 = H.reshape(G, P)
    v2 = v_.reshape(G, L)

    itemsize = jnp.dtype(H.dtype).itemsize
    sublane = {4: 8, 2: 16, 1: 32}[itemsize]    # sublane packing per dtype width
    assert G % sublane == 0, f"B*M*K must be a multiple of {sublane} for this tiling"
    assert P % 128 == 0, "P must be a multiple of 128 for lane alignment"

    Gb = _pick_group_tile(G, P, sublane)

    out = pl.pallas_call(
        conv1d_kernel,
        out_shape=jax.ShapeDtypeStruct((G, P), H.dtype),
        grid=(G // Gb,),
        in_specs=[
            pl.BlockSpec((Gb, P), lambda i: (i, 0)),
            pl.BlockSpec((Gb, L), lambda i: (i, 0)),
        ],
        out_specs=pl.BlockSpec((Gb, P), lambda i: (i, 0)),
        compiler_params=pltpu.CompilerParams(
            dimension_semantics=("parallel",),
            vmem_limit_bytes=48 * 1024 * 1024,
        ),
        cost_estimate=pl.CostEstimate(
            flops=2 * L * G * P,
            transcendentals=0,
            bytes_accessed=(2 * G * P + G * L) * itemsize,
        ),
    )(h2, v2)
    return out


if __name__ == "__main__":
    key = jax.random.PRNGKey(0)
    kH, kv = jax.random.split(key)

    # small shapes consistent with the module's forward
    B, M, K, P, L = 2, 2, 4, 128, 5
    H = jax.random.normal(kH, (B, M, K, P), dtype=jnp.float32)
    v_ = jax.random.normal(kv, (B, M, K, L), dtype=jnp.float32)

    out = module_conv1d(H, v_)
    jax.block_until_ready(out)

    # pure-JAX reference: full convolution per group, truncated to P samples
    ref = jax.vmap(lambda a, b: jnp.convolve(a, b, mode="full")[:P])(
        H.reshape(-1, P), v_.reshape(-1, L))

    assert out.shape == (B * M * K, P)
    assert jnp.allclose(out, ref, atol=1e-4, rtol=1e-4)
    print("KERNEL_OK")
</pallas_src>

<mosaic_0001>
module attributes {stable_mosaic.version = 11 : i64} {
  func.func @conv1d_kernel(%arg0: i32, %arg1: memref<8x128xf32, #tpu.memory_space<vmem>>, %arg2: memref<8x5xf32, #tpu.memory_space<vmem>>, %arg3: memref<8x128xf32, #tpu.memory_space<vmem>>) attributes {dimension_semantics = [#tpu.dimension_semantics<parallel>], iteration_bounds = array<i64: 2>, scalar_prefetch = 0 : i64, scratch_operands = 0 : i64, tpu.core_type = #tpu.core_type<tc>, window_params = [{transform_indices = @transform_0, window_bounds = array<i64: 8, 128>}, {transform_indices = @transform_1, window_bounds = array<i64: 8, 5>}, {transform_indices = @transform_2, window_bounds = array<i64: 8, 128>}]} {
    %c0 = arith.constant 0 : index
    %c0_0 = arith.constant 0 : index
    %0 = vector.load %arg1[%c0, %c0_0] : memref<8x128xf32, #tpu.memory_space<vmem>>, vector<8x128xf32>
    %c0_1 = arith.constant 0 : index
    %c0_2 = arith.constant 0 : index
    %1 = vector.load %arg2[%c0_1, %c0_2] : memref<8x5xf32, #tpu.memory_space<vmem>>, vector<8x5xf32>
    %2 = tpu.iota {dimensions = array<i32: 1>} : vector<8x128xi32>
    %3 = vector.extract_strided_slice %1 {offsets = [0, 0], sizes = [8, 1], strides = [1, 1]} : vector<8x5xf32> to vector<8x1xf32>
    %4 = vector.broadcast %3 : vector<8x1xf32> to vector<8x128xf32>
    %5 = arith.mulf %4, %0 : vector<8x128xf32>
    %c1_i32 = arith.constant 1 : i32
    %6 = tpu.dynamic_rotate %0 by %c1_i32 dim 1 : vector<8x128xf32>, i32 -> vector<8x128xf32>
    %7 = vector.extract_strided_slice %1 {offsets = [0, 1], sizes = [8, 1], strides = [1, 1]} : vector<8x5xf32> to vector<8x1xf32>
    %c1_i32_3 = arith.constant 1 : i32
    %8 = vector.broadcast %c1_i32_3 : i32 to vector<8x128xi32>
    %9 = arith.cmpi sge, %2, %8 : vector<8x128xi32>
    %cst = arith.constant 0.000000e+00 : f32
    %10 = vector.broadcast %cst : f32 to vector<8x128xf32>
    %11 = arith.select %9, %6, %10 : vector<8x128xi1>, vector<8x128xf32>
    %12 = vector.broadcast %7 : vector<8x1xf32> to vector<8x128xf32>
    %13 = arith.mulf %12, %11 : vector<8x128xf32>
    %14 = arith.addf %5, %13 : vector<8x128xf32>
    %c2_i32 = arith.constant 2 : i32
    %15 = tpu.dynamic_rotate %0 by %c2_i32 dim 1 : vector<8x128xf32>, i32 -> vector<8x128xf32>
    %16 = vector.extract_strided_slice %1 {offsets = [0, 2], sizes = [8, 1], strides = [1, 1]} : vector<8x5xf32> to vector<8x1xf32>
    %c2_i32_4 = arith.constant 2 : i32
    %17 = vector.broadcast %c2_i32_4 : i32 to vector<8x128xi32>
    %18 = arith.cmpi sge, %2, %17 : vector<8x128xi32>
    %cst_5 = arith.constant 0.000000e+00 : f32
    %19 = vector.broadcast %cst_5 : f32 to vector<8x128xf32>
    %20 = arith.select %18, %15, %19 : vector<8x128xi1>, vector<8x128xf32>
    %21 = vector.broadcast %16 : vector<8x1xf32> to vector<8x128xf32>
    %22 = arith.mulf %21, %20 : vector<8x128xf32>
    %23 = arith.addf %14, %22 : vector<8x128xf32>
    %c3_i32 = arith.constant 3 : i32
    %24 = tpu.dynamic_rotate %0 by %c3_i32 dim 1 : vector<8x128xf32>, i32 -> vector<8x128xf32>
    %25 = vector.extract_strided_slice %1 {offsets = [0, 3], sizes = [8, 1], strides = [1, 1]} : vector<8x5xf32> to vector<8x1xf32>
    %c3_i32_6 = arith.constant 3 : i32
    %26 = vector.broadcast %c3_i32_6 : i32 to vector<8x128xi32>
    %27 = arith.cmpi sge, %2, %26 : vector<8x128xi32>
    %cst_7 = arith.constant 0.000000e+00 : f32
    %28 = vector.broadcast %cst_7 : f32 to vector<8x128xf32>
    %29 = arith.select %27, %24, %28 : vector<8x128xi1>, vector<8x128xf32>
    %30 = vector.broadcast %25 : vector<8x1xf32> to vector<8x128xf32>
    %31 = arith.mulf %30, %29 : vector<8x128xf32>
    %32 = arith.addf %23, %31 : vector<8x128xf32>
    %c4_i32 = arith.constant 4 : i32
    %33 = tpu.dynamic_rotate %0 by %c4_i32 dim 1 : vector<8x128xf32>, i32 -> vector<8x128xf32>
    %34 = vector.extract_strided_slice %1 {offsets = [0, 4], sizes = [8, 1], strides = [1, 1]} : vector<8x5xf32> to vector<8x1xf32>
    %c4_i32_8 = arith.constant 4 : i32
    %35 = vector.broadcast %c4_i32_8 : i32 to vector<8x128xi32>
    %36 = arith.cmpi sge, %2, %35 : vector<8x128xi32>
    %cst_9 = arith.constant 0.000000e+00 : f32
    %37 = vector.broadcast %cst_9 : f32 to vector<8x128xf32>
    %38 = arith.select %36, %33, %37 : vector<8x128xi1>, vector<8x128xf32>
    %39 = vector.broadcast %34 : vector<8x1xf32> to vector<8x128xf32>
    %40 = arith.mulf %39, %38 : vector<8x128xf32>
    %41 = arith.addf %32, %40 : vector<8x128xf32>
    %c0_10 = arith.constant 0 : index
    %c0_11 = arith.constant 0 : index
    %42 = vector.load %arg3[%c0_10, %c0_11] : memref<8x128xf32, #tpu.memory_space<vmem>>, vector<8x128xf32>
    tpu.vector_store %arg3[%c0_10, %c0_11], %41 {strides = array<i32>} : memref<8x128xf32, #tpu.memory_space<vmem>>, vector<8x128xf32>,
    return
  }
  func.func @transform_0(%arg0: i32) -> (i32, i32) {
    %c0_i32 = arith.constant 0 : i32
    %c0_i32_0 = arith.constant 0 : i32
    return %arg0, %c0_i32 : i32, i32
  }
  func.func @transform_1(%arg0: i32) -> (i32, i32) {
    %c0_i32 = arith.constant 0 : i32
    %c0_i32_0 = arith.constant 0 : i32
    return %arg0, %c0_i32 : i32, i32
  }
  func.func @transform_2(%arg0: i32) -> (i32, i32) {
    %c0_i32 = arith.constant 0 : i32
    %c0_i32_0 = arith.constant 0 : i32
    return %arg0, %c0_i32 : i32, i32
  }
}

</mosaic_0001>

<bundles_post_ra>
// kernel: tpu_custom_call.1
= control target key start
LH: loop header
LB: loop body
LE: loop exit
PB: predicated region body
PF: predicated region fallthrough
CT: control target
= control target key end

     0   :  { %7 = vsyncpa [#allocation3], 0  ;;  %s548_s0 = inlined_call_operand.vmem [shape: f32[16,128], index: 0, kind: input, shape index: {}]   ;;  %s549_s1 = inlined_call_operand.vmem [shape: f32[16,5], index: 1, kind: input, shape index: {}]   ;;  %s550_s2 = inlined_call_operand.hbm [shape: f32[16,128], index: 2, kind: output, shape index: {}]  }
   0x1   :  { %9 = vsyncpa [#allocation3 + $0x1], 0  ;;  %s445_s9 = smov 0   ;;  %s447_s10 = smov 0  }
   0x2   :  { %s449_s11 = smov 0   ;;  %s451_s12 = smov 0  }
   0x3 LB: > { %s466_s13 = sadd.s32 4294967295, %s418_s12   ;;  %s292_s14 = sadd.s32 4294967294, %s418_s12   ;;  %s418_s12 = sphi %s451_s12, %s556_s12   ;;  %s414_s11 = sphi %s449_s11, %s555_s11   ;;  %s410_s10 = sphi %s447_s10, %s554_s10   ;;  %s406_s9 = sphi %s445_s9, %s553_s9  }
   0x4   : > { %s470_s15 = sadd.s32 1, %s418_s12   ;;  %s74_s16 = sadd.s32 1, %s414_s11 }
   0x5   : > { %s71_s17 = ssub.s32 %s418_s12, %s470_s15  ;;  %p84_p0 = scmp.ne.s32.totalorder %s414_s11, %s410_s10 }
   0x6   : > { %p72_p1 = scmp.eq.s32.totalorder %s71_s17, 0  ;;  %p85_p2 = scmp.eq.s32.totalorder %s466_s13, 1 }
   0x7   : > { %p90_p3 = scmp.ne.s32.totalorder %s410_s10, %s406_s9  ;;  %p91_p4 = scmp.eq.s32.totalorder %s292_s14, 1 }
   0x8   : > { %s481_s18 = scalar_select %p72_p1, %s414_s11, %s74_s16  }
   0x9   : > { %p483_p5 = por %p85_p2, %p84_p0  ;;  %p487_p6 = por %p91_p4, %p90_p3 }
   0xa   : > { %p295_p7 = scmp.ge.s32.totalorder %s418_s12, 1  ;;  %p123_p8 = scmp.lt.s32.totalorder %s418_s12, 3 }
   0xc   : > { %p124_p9 = pnand %p295_p7, %p123_p8 }
   0xd   : > { %p148_p10 = scmp.lt.s32.totalorder (!%p124_p9), %s466_s13, 1  ;;  %v420_v0 = vmov (!%p124_p9), 2   ;;  %v421_v1 = vmov (!%p124_p9), 0   ;;  %v422_v3 = vmov (!%p124_p9), 3   ;;  %v423_v4 = vmov (!%p124_p9), 1   ;;  %s425_s29 = smov (!%p124_p9), 1  }
   0xe   : > { %127 = sbr.rel (%p124_p9) target bundleno = 192 (0xc0), region = 28  ;;  %353 = vset.pattern.permute.xlu1 (!%p124_p9), %v420_v0  ;;  %351 = vset.pattern.permute.xlu0 (!%p124_p9), %v421_v1  ;;  %v424_v6 = vmov (!%p124_p9), 4   ;;  %s426_s30 = smov (!%p124_p9), 2   ;;  %v158_v7 = vlaneseq (!%p124_p9) }
   0xf   : > { %s427_s3 = smov (!%p124_p9), 4   ;;  %s428_s4 = smov (!%p124_p9), 3  }
  0x10   : > { %v159_v10 = vand.u32 (!%p124_p9), 127, %v158_v7  ;;  %s145_s5 = sand.u32 (!%p124_p9), 1, %s410_s10   ;;  %s300_s7 = sshll.u32 (!%p124_p9), %s466_s13, 7 }
  0x11   : > { %s296_s6 = sshll.u32 (!%p124_p9), %s145_s5, 3 }
  0x12   : > { %vm168_vm0 = vcmp.ge.s32.totalorder (!%p124_p9), %v159_v10, 1  ;;  %vm178_vm1 = vcmp.ge.s32.totalorder (!%p124_p9), %v159_v10, 2  ;;  %vm198_vm2 = vcmp.ge.s32.totalorder (!%p124_p9), %v159_v10, 4  ;;  %vm188_vm3 = vcmp.ge.s32.totalorder (!%p124_p9), %v159_v10, 3  ;;  %s147_s8 = scalar_lea.vmem (!%p124_p9), [#allocation2], %s296_s6 }
  0x13   : > { %s221_s14 = sshll.u32 (!%p124_p9), %s147_s8, 4  ;;  %s508_s14 = int_to_ptr.vmem [resolvable:$true] %s221_s14 }
  0x14   : > { %s356_s23 = scalar_lea.vmem (!%p124_p9), %s508_s14, 128 }
  0x15   : > { %s149_s21 = scalar_select %p148_p10, %s466_s13, 1 }
  0x16   : > { %p357_p11 = scmp.ne.s32.totalorder %s508_s14, %s356_s23  ;;  %s429_s13 = smov [#allocation2]  }
  0x17   : > { %s297_s22 = sshll.u32 %s149_s21, 3  ;;  %s506_s21 = scalar_lea.hbm %s550_s2, %s300_s7 }
  0x18   : > { %s155_s25 = scalar_lea.vmem %s549_s1, %s297_s22  ;;  %s151_s28 = scalar_lea.vmem %s548_s0, %s297_s22 }
  0x19   : > { %v157_v2 = vld [vmem:[%s155_s25] sm:$0xff]  ;;  %s208_s22 = scalar_lea.sflag [#allocation3], %s145_s5  ;;  %p358_p12 = pnand %p357_p11, %p483_p5 }
  0x1a   : > { %181 = vperm.xlu1 %353, %v157_v2   ;;  %162 = vperm.xlu0 %351, %v157_v2   ;;  %v156_v5 = vld [vmem:[%s151_s28] sm:$0xff]  ;;  %s360_s24 = sshll.u32 %s429_s13, 4  ;;  %s361_s24 = int_to_ptr.vmem [resolvable:$false] %s360_s24 }
  0x1b   : > { %p359_p13 = pneg %p358_p12  ;;  %s362_s25 = scalar_lea.vmem %s361_s24, 256 }
  0x1c   : > { %p363_p0 = scmp.lt.s32.totalorder %s508_s14, %s361_s24  ;;  %p364_p1 = scmp.lt.s32.totalorder %s362_s25, %s356_s23 }
  0x1e   : > { %354 = vset.pattern.permute.xlu1 %v422_v3  ;;  %352 = vset.pattern.permute.xlu0 %v423_v4  ;;  %p365_p2 = por %p364_p1, %p363_p0 }
  0x1f   : > { %191 = vperm.xlu1 %354, %v157_v2   ;;  %171 = vperm.xlu0 %352, %v157_v2  }
  0x20   : > { %p366_p3 = pnand %p365_p2, %p359_p13 }
  0x23   : > { %355 = vset.pattern.permute.xlu0 %v424_v6  ;;  %166 = vrot.lane.b32.xlu1 %v156_v5, %s425_s29 }
  0x24   : > { %201 = vperm.xlu0 %355, %v157_v2  }
  0x27   : > { %176 = vrot.lane.b32.xlu1 %v156_v5, %s426_s30 }
  0x28   : > { %196 = vrot.lane.b32.xlu0 %v156_v5, %s427_s3 }
  0x2b   : > { %186 = vrot.lane.b32.xlu1 %v156_v5, %s428_s4 }
  0x99   : > { %v182_v8 = vpop.permute.xlu1 %181  ;;  %v163_v9 = vpop.permute.xlu0 %162 }
  0x9a   : > { %v165_v19 = vmul.f32 %v163_v9, %v156_v5 }
  0x9e   : > { %v192_v11 = vpop.permute.xlu1 %191  ;;  %v172_v12 = vpop.permute.xlu0 %171 }
  0xa2   : > { %v167_v13 = vpop.permute.xlu1 %166 }
  0xa3   : > { %v169_v14 = vsel %vm168_vm0, %v167_v13, 0.0  ;;  %v202_v15 = vpop.permute.xlu0 %201 }
  0xa4   : > { %v174_v16 = vmul.f32 %v172_v12, %v169_v14 }
  0xa6   : > { %v177_v17 = vpop.permute.xlu1 %176  ;;  %v175_v22 = vadd.f32 %v174_v16, %v165_v19 }
  0xa7   : > { %v179_v18 = vsel %vm178_vm1, %v177_v17, 0.0  ;;  %v197_v21 = vpop.permute.xlu0 %196 }
  0xa8   : > { %v184_v20 = vmul.f32 %v182_v8, %v179_v18  ;;  %v199_v24 = vsel %vm198_vm2, %v197_v21, 0.0 }
  0xa9   : > { %v204_v28 = vmul.f32 %v202_v15, %v199_v24 }
  0xaa   : > { %v187_v23 = vpop.permute.xlu1 %186  ;;  %v185_v26 = vadd.f32 %v184_v20, %v175_v22 }
  0xab   : > { %v189_v25 = vsel %vm188_vm3, %v187_v23, 0.0 }
  0xac   : > { %v194_v27 = vmul.f32 %v192_v11, %v189_v25 }
  0xae   : > { %v195_v29 = vadd.f32 %v194_v27, %v185_v26 }
  0xb0   : > { %v205_v30 = vadd.f32 %v204_v28, %v195_v29 }
  0xb2   : > { %206 = vst [vmem:[%s147_s8] sm:$0xff] %v205_v30 }
  0xb3   : > { %369 = shalt.err (!%p366_p3)
}
  0xb4   : > { %s370_s26 = scalar_lea.hbm %s506_s21, 128  ;;  %s374_s29 = scalar_lea.hbm %s550_s2, 256 }
  0xb5   : > { %p371_p4 = scmp.ne.s32.totalorder %s506_s21, %s370_s26  ;;  %p375_p9 = scmp.lt.u32.totalorder %s506_s21, %s550_s2 }
  0xb6   : > { %p376_p10 = scmp.lt.u32.totalorder %s374_s29, %s370_s26  ;;  %p378_p12 = scmp.lt.u32.totalorder %s370_s26, %s506_s21 }
  0xb7   : > { %p372_p7 = pnand %p371_p4, %p483_p5 }
  0xb8   : > { %p377_p11 = por %p376_p10, %p375_p9 }
  0xb9   : > { %p373_p8 = pneg %p372_p7 }
  0xba   : > { %p379_p13 = por %p378_p12, %p377_p11 }
  0xbc   : > { %p380_p0 = pnand %p379_p13, %p373_p8 }
  0xbe   : > { %383 = shalt.err (!%p380_p0)
}
  0xbf   : > { %303 = dma.vmem_to_hbm [thread:$0]  (%p483_p5), %s508_s14, 128, %s506_s21, %s208_s22  }
  0xc0 PF: > { %p309_p1 = scmp.ge.s32.totalorder %s418_s12, 2  ;;  %s233_s4 = sand.u32 1, %s406_s9  }
  0xc1   : > { %s234_s5 = scalar_lea.sflag [#allocation3], %s233_s4 }
  0xc2   : > { %p306_p2 = pnand %p309_p1, %p487_p6 }
  0xc4   : > { %401 = dma.done.wait (!%p306_p2), %s234_s5, 128  }
  0xc5   : > { %403 = vsyncadd (!%p306_p2), %s234_s5, 4294967168  ;;  %p12_p3 = scmp.ge.s32.totalorder %s470_s15, 4   ;;  %s553_s9 = smov %s410_s10 }
  0xc6   : > { %s554_s10 = smov %s414_s11  ;;  %s555_s11 = smov %s481_s18 }
  0xc7   : > { %s556_s12 = smov %s470_s15  ;;  %14 = sbr.rel (!%p12_p3) target bundleno = 3 (0x3), region = 66 }
  0xce   :  { %239 = vsyncpa [#allocation3], 1 }
  0xcf   :  { %241 = vsyncpa [#allocation3 + $0x1], 1 }

</bundles_post_ra>
